<compile_context>
chip_gen: v7x
topology: tpu7x:2x2x1
jax: 0.10.0
libtpu: 0.0.40
codegen_flags: <defaults>
</compile_context>

<pallas_src>
import jax
import jax.numpy as jnp
import numpy as np
from jax.experimental import pallas as pl
from jax.experimental.pallas import tpu as pltpu


def _multipatch_kernel(x_ref, sel_ref, o_ref):
    """One (batch-tile, dilation) grid step.

    x_ref  : (tb, h_out, L)     channel-subsampled, time-last input tile
    sel_ref: (L, NP_pad)        one-hot gather selector for this dilation
    o_ref  : (tb, h_out, NP_pad) lane-dense output tile, already in final layout
    """
    g = jax.lax.dot_general(
        x_ref[...],
        sel_ref[...],
        dimension_numbers=(((2,), (0,)), ((), ())),
        preferred_element_type=jnp.float32,
    )
    o_ref[...] = g.astype(o_ref.dtype)


def multipatch_pallas(x, lookback_len, patch_len, patch_stride,
                      *, vmem_budget_bytes=20 << 20):
    assert patch_len >= 2, "patch_len must be >= 2 (module divides by patch_len - 1)"
    B, L, C = x.shape
    assert L == lookback_len

    dimension = lookback_len // (patch_len - 1)
    patch_num = (lookback_len - patch_len + patch_stride) // patch_stride
    h_out = (C - 1) // patch_stride + 1          # torch Unfold strides channels too
    np_cols = patch_num * patch_len
    np_pad = ((np_cols + 127) // 128) * 128      # lane-dense output stores
    elt = x.dtype.itemsize

    # ---- host-side one-hot selectors (encode unfold + replication padding) ----
    dil = np.arange(1, dimension + 1, dtype=np.int64)[:, None]        # (D, 1)
    col = np.arange(np_cols, dtype=np.int64)[None, :]                 # (1, NP)
    w = col // patch_len
    j = col % patch_len
    pad_l = ((dil - 1) * (patch_len - 1)) // 2                        # left pad
    t_idx = np.clip(w * patch_stride + j * dil - pad_l, 0, L - 1)     # (D, NP)
    sel_np = np.zeros((dimension, L, np_pad), dtype=np.float32)
    sel_np[np.arange(dimension)[:, None], t_idx, col] = 1.0           # padded cols stay 0
    sel = jnp.asarray(sel_np, dtype=x.dtype)

    # ---- input glue (small, one-time): channel subsample, then time-last ------
    xf = jnp.transpose(x[:, :, ::patch_stride], (0, 2, 1))            # (B, h_out, L)

    # ---- batch tile sized against a VMEM budget (v7x-safe), explicit limit ----
    sel_bytes = 2 * L * np_pad * elt                                  # double-buffered
    per_b = 2 * h_out * (L + np_pad) * elt                            # x + out, dbl-buffered
    tb = int(max(1, min(B, (vmem_budget_bytes - sel_bytes) // max(per_b, 1))))
    work_bytes = sel_bytes + tb * per_b
    vmem_limit = int(min(64 << 20, max(32 << 20, work_bytes + (8 << 20))))

    grid = (pl.cdiv(B, tb), dimension)

    cost = pl.CostEstimate(
        flops=2 * B * h_out * L * np_pad * dimension,
        transcendentals=0,
        bytes_accessed=(B * h_out * L
                        + dimension * L * np_pad
                        + B * dimension * h_out * np_pad) * elt,
    )

    out_padded = pl.pallas_call(
        _multipatch_kernel,
        out_shape=jax.ShapeDtypeStruct((B, dimension, h_out, np_pad), x.dtype),
        grid=grid,
        in_specs=[
            # x tile: revisited across the (inner) dilation axis -> DMA'd once per b-tile
            pl.BlockSpec((tb, h_out, L), lambda bi, d: (bi, 0, 0)),
            # selector for dilation d: streamed, revisited across batch tiles
            pl.BlockSpec((None, L, np_pad), lambda bi, d: (d, 0, 0)),
        ],
        out_specs=pl.BlockSpec((tb, None, h_out, np_pad),
                               lambda bi, d: (bi, d, 0, 0)),
        compiler_params=pltpu.CompilerParams(
            dimension_semantics=("parallel", "arbitrary"),
            vmem_limit_bytes=vmem_limit,
        ),
        cost_estimate=cost,
    )(xf, sel)

    # (B, D, h_out, NP_pad) -> strip lane padding (no-op when NP % 128 == 0)
    # -> free contiguous view to the module's (B, D, h_out*patch_num, patch_len).
    out = out_padded[..., :np_cols]
    return out.reshape(B, dimension, h_out * patch_num, patch_len)


def multipatch_ref(x, lookback_len, patch_len, patch_stride):
    """Pure-numpy reference mirroring the PyTorch forward exactly."""
    x = np.asarray(x)
    B, L, C = x.shape
    dimension = lookback_len // (patch_len - 1)
    patch_num = (lookback_len - patch_len + patch_stride) // patch_stride
    h_out = (C - 1) // patch_stride + 1
    xp = np.transpose(x, (0, 2, 1))                # (B, C, L)
    out = np.zeros((B, dimension, h_out * patch_num, patch_len), x.dtype)
    for di in range(dimension):
        d = di + 1
        pad_len = (d - 1) * (patch_len - 1)
        pad_l = pad_len // 2
        for h in range(h_out):
            for w in range(patch_num):
                for jj in range(patch_len):
                    t = min(max(w * patch_stride + jj * d - pad_l, 0), L - 1)
                    out[:, di, h * patch_num + w, jj] = xp[:, h * patch_stride, t]
    return out


if __name__ == "__main__":
    # Small, module-consistent shapes.
    B = 2                 # batch
    lookback_len = 16     # L (time / lookback)
    C = 4                 # channels
    patch_len = 4
    patch_stride = 2

    key = jax.random.PRNGKey(0)
    x = jax.random.normal(key, (B, lookback_len, C), dtype=jnp.float32)

    y = jax.block_until_ready(
        multipatch_pallas(x, lookback_len, patch_len, patch_stride))

    y_ref = multipatch_ref(np.asarray(x), lookback_len, patch_len, patch_stride)
    assert y.shape == y_ref.shape
    np.testing.assert_allclose(np.asarray(y), y_ref, rtol=0, atol=1e-6)

    print("KERNEL_OK")
</pallas_src>

<mosaic_0001>
module attributes {stable_mosaic.version = 11 : i64} {
  func.func @_multipatch_kernel(%arg0: i32, %arg1: i32, %arg2: memref<2x2x16xf32, #tpu.memory_space<vmem>>, %arg3: memref<1x16x128xf32, #tpu.memory_space<vmem>>, %arg4: memref<2x1x2x128xf32, #tpu.memory_space<vmem>>) attributes {dimension_semantics = [#tpu.dimension_semantics<parallel>, #tpu.dimension_semantics<arbitrary>], iteration_bounds = array<i64: 1, 5>, scalar_prefetch = 0 : i64, scratch_operands = 0 : i64, tpu.core_type = #tpu.core_type<tc>, window_params = [{transform_indices = @transform_0, window_bounds = array<i64: 2, 2, 16>}, {transform_indices = @transform_1, window_bounds = array<i64: 1, 16, 128>}, {transform_indices = @transform_2, window_bounds = array<i64: 2, 1, 2, 128>}]} {
    %c0 = arith.constant 0 : index
    %c0_0 = arith.constant 0 : index
    %c0_1 = arith.constant 0 : index
    %0 = vector.load %arg2[%c0, %c0_0, %c0_1] : memref<2x2x16xf32, #tpu.memory_space<vmem>>, vector<2x2x16xf32>
    %c0_2 = arith.constant 0 : index
    %c0_3 = arith.constant 0 : index
    %c0_4 = arith.constant 0 : index
    %1 = vector.load %arg3[%c0_2, %c0_3, %c0_4] : memref<1x16x128xf32, #tpu.memory_space<vmem>>, vector<1x16x128xf32>
    %2 = vector.shape_cast %1 : vector<1x16x128xf32> to vector<16x128xf32>
    %cst = arith.constant dense<0.000000e+00> : vector<2x2x128xf32>
    %3 = tpu.matmul %0, %2, %cst {dimension_numbers = #tpu.dot_dimension_numbers<[2], [0], [0, 1], [1], [0, 0, 0, 1, 1, 1], [], []>} : vector<2x2x16xf32>, vector<16x128xf32>, vector<2x2x128xf32> -> vector<2x2x128xf32>
    %c0_5 = arith.constant 0 : index
    %c0_6 = arith.constant 0 : index
    %c0_7 = arith.constant 0 : index
    %c0_8 = arith.constant 0 : index
    %4 = vector.load %arg4[%c0_5, %c0_6, %c0_7, %c0_8] : memref<2x1x2x128xf32, #tpu.memory_space<vmem>>, vector<2x1x2x128xf32>
    %5 = vector.shape_cast %4 : vector<2x1x2x128xf32> to vector<2x2x128xf32>
    %6 = vector.shape_cast %3 : vector<2x2x128xf32> to vector<2x1x2x128xf32>
    tpu.vector_store %arg4[%c0_5, %c0_6, %c0_7, %c0_8], %6 {strides = array<i32>} : memref<2x1x2x128xf32, #tpu.memory_space<vmem>>, vector<2x1x2x128xf32>,
    return
  }
  func.func @transform_0(%arg0: i32, %arg1: i32) -> (i32, i32, i32) {
    %c0_i32 = arith.constant 0 : i32
    %c0_i32_0 = arith.constant 0 : i32
    %c0_i32_1 = arith.constant 0 : i32
    return %arg0, %c0_i32, %c0_i32_0 : i32, i32, i32
  }
  func.func @transform_1(%arg0: i32, %arg1: i32) -> (i32, i32, i32) {
    %c0_i32 = arith.constant 0 : i32
    %c0_i32_0 = arith.constant 0 : i32
    %c0_i32_1 = arith.constant 0 : i32
    return %arg1, %c0_i32, %c0_i32_0 : i32, i32, i32
  }
  func.func @transform_2(%arg0: i32, %arg1: i32) -> (i32, i32, i32, i32) {
    %c0_i32 = arith.constant 0 : i32
    %c0_i32_0 = arith.constant 0 : i32
    %c0_i32_1 = arith.constant 0 : i32
    return %arg0, %arg1, %c0_i32, %c0_i32_0 : i32, i32, i32, i32
  }
}

</mosaic_0001>

<bundles_post_ra>
// kernel: tpu_custom_call.1
= control target key start
LH: loop header
LB: loop body
LE: loop exit
PB: predicated region body
PF: predicated region fallthrough
CT: control target
= control target key end

     0   :  { %7 = vsyncpa [#allocation3], 0  ;;  %s923_s0 = inlined_call_operand.hbm [shape: f32[2,2,16], index: 0, kind: input, shape index: {}]   ;;  %s924_s1 = inlined_call_operand.hbm [shape: f32[5,16,128], index: 1, kind: input, shape index: {}]   ;;  %s925_s2 = inlined_call_operand.hbm [shape: f32[2,5,2,128], index: 2, kind: output, shape index: {}]  }
   0x1   :  { %8 = vsyncpa [#allocation6], 0 }
   0x2   :  { %10 = vsyncpa [#allocation6 + $0x1], 0 }
   0x3   :  { %11 = vsyncpa [#allocation4], 0 }
   0x4   :  { %13 = vsyncpa [#allocation4 + $0x1], 0  ;;  %s705_s9 = smov 0   ;;  %s707_s10 = smov 0  }
   0x5   :  { %s709_s11 = smov 0   ;;  %s711_s12 = smov 0  }
   0x6   :  { %s713_s13 = smov 0   ;;  %s715_s14 = smov 0  }
   0x7 LB: > { %s414_s15 = sadd.s32 4294967295, %s674_s14   ;;  %s415_s16 = sadd.s32 4294967294, %s674_s14   ;;  %s674_s14 = sphi %s715_s14, %s19_s14   ;;  %s670_s13 = sphi %s713_s13, %s948_s13   ;;  %s666_s12 = sphi %s711_s12, %s947_s12   ;;  %s662_s11 = sphi %s709_s11, %s946_s11   ;;  %s658_s10 = sphi %s707_s10, %s945_s10   ;;  %s654_s9 = sphi %s705_s9, %s944_s9  }
   0x8   : > { %p77_p0 = scmp.ne.s32.totalorder %s658_s10, %s654_s9  ;;  %p739_p1 = scmp.eq.s32.totalorder %s414_s15, 0 }
   0x9   : > { %p743_p2 = scmp.eq.s32.totalorder %s414_s15, 4  ;;  %p109_p3 = scmp.eq.s32.totalorder %s415_s16, 4 }
   0xa   : > { %s930_s17 = scalar_select %p739_p1, 1, 0 }
   0xb   : > { %s931_s18 = scalar_select %p743_p2, 1, 0 }
   0xc   : > { %p749_p4 = por %p739_p1, %p77_p0  ;;  %p416_p5 = scmp.ge.s32.totalorder %s674_s14, 1 }
   0xd   : > { %p754_p6 = por %p109_p3, %p77_p0  ;;  %p116_p7 = scmp.lt.s32.totalorder %s674_s14, 6 }
   0xe   : > { %s932_s19 = scalar_select %p749_p4, 1, 0 }
   0xf   : > { %s933_s20 = scalar_select %p754_p6, 1, 0 }
  0x10   : > { %p759_p8 = pnand %p416_p5, %p116_p7  ;;  %s676_s22 = smov [#allocation2]  }
  0x11   : > { %s131_s23 = sshll.u32 %s676_s22, 4  ;;  %s28_s25 = sadd.s32 1, %s670_s13  ;;  %s132_s23 = int_to_ptr.vmem [resolvable:$true] %s131_s23 }
  0x12   : > { %s934_s21 = scalar_select %p759_p8, 1, 0 }
  0x13   : > { %p454_p9 = pneg %p759_p8  ;;  %s530_s28 = scalar_lea.hbm %s923_s0, 64 }
  0x14   : > { %p531_p11 = scmp.ne.s32.totalorder %s923_s0, %s530_s28  ;;  %p537_p3 = scmp.lt.u32.totalorder %s530_s28, %s923_s0 }
  0x15   : > { %p767_p10 = pnand %p454_p9, %p739_p1 }
  0x17   : > { %p532_p12 = pneg %p767_p10 }
  0x19   : > { %p533_p13 = pnand %p532_p12, %p531_p11 }
  0x1b   : > { %p534_p0 = pneg %p533_p13 }
  0x1d   : > { %p539_p5 = pnand %p537_p3, %p534_p0 }
  0x1f   : > { %542 = shalt.err (!%p539_p5)
}
  0x20   : > { %s543_s5 = scalar_lea.vmem %s132_s23, 64  ;;  %p551_p4 = scmp.lt.s32.totalorder %s132_s23, %s132_s23 }
  0x21   : > { %p544_p7 = scmp.ne.s32.totalorder %s132_s23, %s543_s5  ;;  %p552_p1 = scmp.lt.s32.totalorder %s543_s5, %s543_s5 }
  0x23   : > { %p546_p9 = pnand %p544_p7, %p532_p12  ;;  %p553_p8 = por %p552_p1, %p551_p4 }
  0x25   : > { %p547_p6 = pneg %p546_p9 }
  0x27   : > { %p554_p2 = pnand %p553_p8, %p547_p6 }
  0x29   : > { %557 = shalt.err (!%p554_p2)
}
  0x2a   : > { %s677_s6 = smov 32   ;;  %s678_s7 = smov 2  }
  0x2b   : > { %457 = dma.hbm_to_vmem [thread:$0]  (!%p767_p10), %s923_s0, 64, %s132_s23, [#allocation3], %s677_s6, %s677_s6, %s678_s7  }
  0x2c   : > { %p29_p1 = scmp.ge.s32.totalorder %s28_s25, 5  ;;  %s64_s16 = sadd.s32 1, %s662_s11 }
  0x2d   : > { %p71_p2 = scmp.ne.s32.totalorder %s662_s11, %s658_s10  ;;  %p72_p4 = scmp.eq.s32.totalorder %s674_s14, 0 }
  0x2e   : > { %s950_s25 = smov (%p29_p1, %s28_s25), 0  ;;  %p937_p8 = scmp.ne.s32.totalorder %s931_s18, 0 }
  0x2f   : > { %p794_p6 = por %p72_p4, %p71_p2  ;;  %s61_s24 = ssub.s32 %s670_s13, %s950_s25 }
  0x30   : > { %p800_p11 = por %p937_p8, %p71_p2  ;;  %p467_p12 = scmp.lt.s32.totalorder %s674_s14, 5 }
  0x31   : > { %p62_p10 = scmp.eq.s32.totalorder %s61_s24, 0  ;;  %s145_s23 = sand.u32 1, %s662_s11  }
  0x32   : > { %s419_s27 = sshll.u32 %s145_s23, 4  ;;  %s432_s29 = sshll.u32 %s670_s13, 8 }
  0x33   : > { %s809_s28 = scalar_select %p62_p10, %s662_s11, %s64_s16  }
  0x34   : > { %s815_s4 = scalar_lea.hbm %s924_s1, %s432_s29  ;;  %s149_s18 = scalar_lea.vmem [#allocation5], %s419_s27 }
  0x35   : > { %s156_s5 = sshll.u32 %s149_s18, 4  ;;  %p821_p13 = pnand %p467_p12, %p794_p6  ;;  %s817_s5 = int_to_ptr.vmem [resolvable:$true] %s156_s5 }
  0x36   : > { %s825_s7 = scalar_lea.sflag [#allocation6], %s145_s23  ;;  %s558_s8 = scalar_lea.hbm %s815_s4, 256 }
  0x37   : > { %p559_p0 = scmp.ne.s32.totalorder %s815_s4, %s558_s8  ;;  %p560_p3 = pneg %p821_p13 }
  0x38   : > { %s563_s22 = scalar_lea.hbm %s924_s1, 1280  ;;  %p564_p9 = scmp.lt.u32.totalorder %s815_s4, %s924_s1 }
  0x39   : > { %p561_p5 = pnand %p560_p3, %p559_p0  ;;  %p565_p1 = scmp.lt.u32.totalorder %s563_s22, %s558_s8 }
  0x3a   : > { %p567_p4 = scmp.lt.u32.totalorder %s558_s8, %s815_s4 }
  0x3b   : > { %p562_p7 = pneg %p561_p5  ;;  %p566_p2 = por %p565_p1, %p564_p9 }
  0x3d   : > { %p568_p6 = por %p567_p4, %p566_p2 }
  0x3f   : > { %p569_p8 = pnand %p568_p6, %p562_p7 }
  0x41   : > { %572 = shalt.err (!%p569_p8)
}
  0x42   : > { %s573_s23 = scalar_lea.vmem %s817_s5, 256  ;;  %s679_s29 = smov [#allocation5]  }
  0x43   : > { %p574_p12 = scmp.ne.s32.totalorder %s817_s5, %s573_s23  ;;  %s578_s30 = sshll.u32 %s679_s29, 4  ;;  %s579_s30 = int_to_ptr.vmem [resolvable:$false] %s578_s30 }
  0x44   : > { %s580_s3 = scalar_lea.vmem %s579_s30, 512  ;;  %p581_p5 = scmp.lt.s32.totalorder %s817_s5, %s579_s30 }
  0x45   : > { %p576_p10 = pnand %p574_p12, %p560_p3  ;;  %p582_p9 = scmp.lt.s32.totalorder %s580_s3, %s573_s23 }
  0x47   : > { %p577_p0 = pneg %p576_p10  ;;  %p583_p1 = por %p582_p9, %p581_p5 }
  0x49   : > { %p584_p2 = pnand %p583_p1, %p577_p0 }
  0x4b   : > { %587 = shalt.err (!%p584_p2)
}
  0x4c   : > { %s680_s18 = smov 128   ;;  %s681_s8 = smov 8  }
  0x4d   : > { %461 = dma.hbm_to_vmem [thread:$0]  (!%p821_p13), %s815_s4, 256, %s817_s5, %s825_s7, %s680_s18, %s680_s18, %s681_s8  }
  0x4e   : > { %p940_p3 = scmp.ne.s32.totalorder %s934_s21, 0 }
  0x4f   : > { %p941_p7 = scmp.ne.s32.totalorder (!%p940_p3), %s930_s17, 0 }
  0x50   : > { %168 = sbr.rel (%p940_p3) target bundleno = 333 (0x14d), region = 28 }
  0x57   : > { %641 = dma.done.wait (%p941_p7), [#allocation3], 64  }
  0x58   : > { %643 = vsyncadd (%p941_p7), [#allocation3], 4294967232  ;;  %s860_s15 = sand.u32 1, %s658_s10   ;;  %p942_p4 = scmp.ne.s32.totalorder %s932_s19, 0 }
  0x59   : > { %s424_s16 = sshll.u32 %s860_s15, 4  ;;  %s175_s22 = scalar_lea.sflag [#allocation6], %s860_s15 }
  0x5a   : > { %s178_s24 = scalar_lea.vmem [#allocation5], %s424_s16 }
  0x5b   : > { %645 = dma.done.wait (%p942_p4), %s175_s22, 256  }
  0x5c   : > { %647 = vsyncadd (%p942_p4), %s175_s22, 4294967040  ;;  %v682_v0 = vmov 0.0|0.0   ;;  %vm683_vm0 = vmmov 0   ;;  %v684_v1 = vmov 0.0   ;;  %v685_v2 = vmov 1983009808  }
  0x5d   : > { %443 = vmatprep.subr.bf16.mxu0 %v682_v0  ;;  %440 = vmatprep.mubr.msk.f32.mxu0 %vm683_vm0, %v684_v1  ;;  %v209_v3 = vunpack.c.l.s4 %v685_v2  ;;  %v211_v4 = vlaneseq  ;;  %v203_v7 = vld [vmem:[%s178_s24] sm:$0xff]  ;;  %v204_v8 = vld [vmem:[%s178_s24 + $0x8] sm:$0xff]  ;;  %vm215_vm1 = vcmask 130048   ;;  %s425_s17 = sshll.u32 %s860_s15, 2  ;;  %s429_s4 = sshll.u32 %s666_s12, 5 }
  0x5e   : > { %v201_v9 = vld [vmem:[#allocation2] sm:$0x3]  ;;  %v444_v11 = vpack.c.bf16 %v204_v8, %v203_v7  ;;  %v202_v12 = vld [vmem:[#allocation2 + $0x2] sm:$0x3]  ;;  %s198_s19 = scalar_lea.vmem [#allocation7], %s425_s17  ;;  %s875_s7 = scalar_lea.hbm %s925_s2, %s429_s4 }
  0x5f   : > { %v210_v5 = vunpack.c.0.s8 %v209_v3  ;;  %v212_v6 = vshrl.u32 %v211_v4, 7  ;;  %v207_v13 = vcombine.low %v201_v9, %v202_v12  ;;  %s317_s21 = sshll.u32 %s198_s19, 4  ;;  %s302_s27 = scalar_lea.sflag [#allocation4], %s860_s15  ;;  %s870_s21 = int_to_ptr.vmem [resolvable:$true] %s317_s21 }
  0x60   : > { %445 = vmatpush3.bf16.msra.mxu0 %v444_v11  ;;  %s588_s23 = scalar_lea.vmem %s870_s21, 64  ;;  %s686_s12 = smov [#allocation7]  }
  0x61   : > { %v213_v10 = vsub.s32 %v210_v5, %v212_v6  ;;  %p589_p13 = scmp.ne.s32.totalorder %s870_s21, %s588_s23  ;;  %s592_s29 = sshll.u32 %s686_s12, 4  ;;  %s593_s29 = int_to_ptr.vmem [resolvable:$false] %s592_s29 }
  0x62   : > { %s594_s30 = scalar_lea.vmem %s593_s29, 128  ;;  %p595_p12 = scmp.lt.s32.totalorder %s870_s21, %s593_s29 }
  0x63   : > { %v214_v14 = vrot.slane %v207_v13, %v213_v10  ;;  %p590_p6 = pnand %p589_p13, %p800_p11  ;;  %p596_p10 = scmp.lt.s32.totalorder %s594_s30, %s588_s23 }
  0x65   : > { %441 = vmatmul.mubr.msk.f32.vlgmr.msra.gmra.mrb[0].mxu0 %vm215_vm1, %v214_v14  ;;  %p591_p8 = pneg %p590_p6  ;;  %p597_p0 = por %p596_p10, %p595_p12 }
  0x67   : > { %p598_p5 = pnand %p597_p0, %p591_p8 }
 0x138   : > { %v284_v15 = vpop.f32.mrb[0].mxu0 }
 0x139   : > { %v295_v16 = vrot.slane %v284_v15, %v213_v10  ;;  %427 = vst.sshfl [vmem:[%s198_s19] sm:$0x3 pattern:$0x76325410] %v284_v15  ;;  %v442_v17 = vpop.f32.mrb[1].mxu0 }
 0x13b   : > { %v296_v18 = vcombine.high %v295_v16, %v295_v16 }
 0x13d   : > { %300 = vst [vmem:[%s198_s19 + $0x2] sm:$0x3] %v296_v18 }
 0x13e   : > { %601 = shalt.err (!%p598_p5)
}
 0x13f   : > { %s602_s3 = scalar_lea.hbm %s875_s7, 64  ;;  %s606_s16 = scalar_lea.hbm %s925_s2, 320 }
 0x140   : > { %p603_p9 = scmp.ne.s32.totalorder %s875_s7, %s602_s3  ;;  %p607_p3 = scmp.lt.u32.totalorder %s875_s7, %s925_s2 }
 0x141   : > { %p608_p7 = scmp.lt.u32.totalorder %s606_s16, %s602_s3  ;;  %p610_p13 = scmp.lt.u32.totalorder %s602_s3, %s875_s7 }
 0x142   : > { %p604_p1 = pnand %p603_p9, %p800_p11 }
 0x143   : > { %p609_p4 = por %p608_p7, %p607_p3 }
 0x144   : > { %p605_p2 = pneg %p604_p1 }
 0x145   : > { %p611_p6 = por %p610_p13, %p609_p4 }
 0x147   : > { %p612_p8 = pnand %p611_p6, %p605_p2 }
 0x149   : > { %615 = shalt.err (!%p612_p8)
}
 0x14a   : > { %s687_s17 = smov 32   ;;  %s688_s19 = smov 160  }
 0x14b   : > { %s689_s4 = smov 2  }
 0x14c   : > { %452 = dma.vmem_to_hbm [thread:$0]  (%p800_p11), %s870_s21, 64, %s875_s7, %s302_s27, %s687_s17, %s688_s19, %s689_s4  }
 0x14d PF: > { %p469_p12 = scmp.ge.s32.totalorder %s674_s14, 2  ;;  %s332_s5 = sand.u32 1, %s654_s9  }
 0x14e   : > { %p943_p10 = scmp.ne.s32.totalorder %s933_s20, 0  ;;  %s333_s6 = scalar_lea.sflag [#allocation4], %s332_s5 }
 0x150   : > { %p463_p0 = pnand %p469_p12, %p943_p10 }
 0x152   : > { %649 = dma.done.wait (!%p463_p0), %s333_s6, 64  }
 0x153   : > { %651 = vsyncadd (!%p463_p0), %s333_s6, 4294967232  ;;  %s19_s14 = sadd.s32 1, %s674_s14   ;;  %s944_s9 = smov %s658_s10 }
 0x154   : > { %p16_p5 = scmp.ge.s32.totalorder %s19_s14, 7   ;;  %s945_s10 = smov %s662_s11 }
 0x155   : > { %s946_s11 = smov %s809_s28  ;;  %s947_s12 = smov %s670_s13 }
 0x156   : > { %s948_s13 = smov %s950_s25  ;;  %18 = sbr.rel (!%p16_p5) target bundleno = 7 (0x7), region = 79 }
 0x15d   :  { %338 = vsyncpa [#allocation3], 1 }
 0x15e   :  { %340 = vsyncpa [#allocation3 + $0x1], 1 }
 0x15f   :  { %341 = vsyncpa [#allocation6], 1 }
 0x160   :  { %343 = vsyncpa [#allocation6 + $0x1], 1 }
 0x161   :  { %344 = vsyncpa [#allocation4], 1 }
 0x162   :  { %346 = vsyncpa [#allocation4 + $0x1], 1 }

</bundles_post_ra>
